<compile_context>
chip_gen: v5e
topology: v5e:2x2
jax: 0.10.0
libtpu: 0.0.40
codegen_flags: <defaults>
</compile_context>

<pallas_src>
import functools

import jax
import jax.numpy as jnp
from jax import lax
from jax.experimental import pallas as pl
from jax.experimental.pallas import tpu as pltpu

_LANE = 128


def _round_up(x, m):
    return (x + m - 1) // m * m


# ----------------------------- Pallas kernel ------------------------------

def _conv_bn_silu_kernel(x_ref, w_ref, bias_ref, o_ref, acc_ref, *,
                         kh, kw, H, W, use_act):
    """Fused k x k conv (kh*kw shifted-slice matmuls) + folded-BN bias + SiLU.

    x_ref   : (1, H+kh-1, W+kw-1, C1p)  bf16, spatially pre-padded input image
    w_ref   : (kh*kw, C1p, C2p)         bf16, BN-scale-folded weights (resident)
    bias_ref: (1, C2p)                  f32,  folded BN bias
    o_ref   : (1, H, W, C2p)            f32 output tile (lane-dense C2p)
    acc_ref : (H*W, C2p)                f32 VMEM accumulator scratch
    """
    c1p = x_ref.shape[-1]
    c2p = o_ref.shape[-1]

    for t in range(kh * kw):                       # unrolled, small k*k
        ky, kx = divmod(t, kw)
        xs = x_ref[0, ky:ky + H, kx:kx + W, :].reshape(H * W, c1p)   # bf16
        part = jnp.dot(xs, w_ref[t], preferred_element_type=jnp.float32)
        if t == 0:
            acc_ref[...] = part
        else:
            acc_ref[...] += part

    z = acc_ref[...] + bias_ref[...]               # f32 epilogue
    if use_act:
        z = z * jax.nn.sigmoid(z)                  # SiLU (logistic -> EUP)
    o_ref[...] = z.reshape(1, H, W, c2p).astype(o_ref.dtype)


# ------------------------------ JAX wrapper -------------------------------

@functools.partial(jax.jit, static_argnames=("stride", "groups", "act"))
def conv_forward(x_nchw, weight, gamma, beta, mean, var, *,
                 stride=1, groups=1, act=True, eps=1e-3):
    """Forward of Conv(c1, c2, k, s=1, p=autopad(k), g=1, act=True).

    x_nchw : (N, C1, H, W) f32 (PyTorch NCHW); weight: (C2, C1, kh, kw) OIHW.
    BatchNorm uses running statistics (inference semantics), eps=1e-3 as in
    the PyTorch module (nn.BatchNorm2d(c2, eps=0.001)).
    """
    if stride != 1 or groups != 1:
        # TODO(synk): strided / grouped conv variants are not implemented in
        # the Pallas kernel (the module defaults are s=1, g=1).
        raise NotImplementedError("only stride=1, groups=1 supported")

    N, C1, H, W = x_nchw.shape
    C2, _, kh, kw = weight.shape
    assert kh % 2 == 1 and kw % 2 == 1, "autopad 'same' requires odd kernel"
    ph, pw = kh // 2, kw // 2

    C1p = _round_up(C1, _LANE)
    C2p = _round_up(C2, _LANE)

    # Fold BN (running stats) into a weight scale + bias.
    inv_std = gamma / jnp.sqrt(var + eps)                      # (C2,)
    bias = beta - mean * inv_std                               # (C2,)
    w_folded = weight * inv_std[:, None, None, None]           # (C2, C1, kh, kw)

    # Weights: OIHW -> (kh, kw, C1, C2) -> pad channels -> (kh*kw, C1p, C2p), bf16.
    w_taps = jnp.transpose(w_folded, (2, 3, 1, 0))
    w_taps = jnp.pad(w_taps, ((0, 0), (0, 0), (0, C1p - C1), (0, C2p - C2)))
    w_taps = w_taps.reshape(kh * kw, C1p, C2p).astype(jnp.bfloat16)

    bias_p = jnp.pad(bias, (0, C2p - C2)).astype(jnp.float32).reshape(1, C2p)

    # Activations: NCHW -> NHWC, 'same' spatial pad + lane pad, bf16.
    x_nhwc = jnp.transpose(x_nchw, (0, 2, 3, 1))
    x_p = jnp.pad(x_nhwc, ((0, 0), (ph, ph), (pw, pw), (0, C1p - C1)))
    x_p = x_p.astype(jnp.bfloat16)
    Hp, Wp = H + 2 * ph, W + 2 * pw

    kernel = functools.partial(_conv_bn_silu_kernel, kh=kh, kw=kw, H=H, W=W,
                               use_act=bool(act))

    out = pl.pallas_call(
        kernel,
        out_shape=jax.ShapeDtypeStruct((N, H, W, C2p), jnp.float32),
        grid_spec=pltpu.PrefetchScalarGridSpec(
            num_scalar_prefetch=0,
            grid=(N,),
            in_specs=[
                pl.BlockSpec((1, Hp, Wp, C1p), lambda n: (n, 0, 0, 0)),
                pl.BlockSpec((kh * kw, C1p, C2p), lambda n: (0, 0, 0)),
                pl.BlockSpec((1, C2p), lambda n: (0, 0)),
            ],
            out_specs=pl.BlockSpec((1, H, W, C2p), lambda n: (n, 0, 0, 0)),
            scratch_shapes=[pltpu.VMEM((H * W, C2p), jnp.float32)],
        ),
        compiler_params=pltpu.CompilerParams(
            dimension_semantics=("parallel",),
            vmem_limit_bytes=48 * 1024 * 1024,
        ),
    )(x_p, w_taps, bias_p)

    # TODO(synk): for very large feature maps, additionally tile H (with a
    # (kh-1)-row halo) and/or add a C1 reduction grid axis to keep per-step
    # VMEM under the v7x 64 MiB budget.

    return jnp.transpose(out[..., :C2], (0, 3, 1, 2))          # NHWC -> NCHW


# ---------------------------- pure-JAX reference ---------------------------

def _reference_forward(x, weight, gamma, beta, mean, var, *,
                       stride=1, act=True, eps=1e-3):
    kh, kw = weight.shape[2], weight.shape[3]
    dn = ("NCHW", "OIHW", "NCHW")
    y = lax.conv_general_dilated(x, weight, (stride, stride),
                                 ((kh // 2, kh // 2), (kw // 2, kw // 2)),
                                 dimension_numbers=dn)
    y = ((y - mean[None, :, None, None])
         / jnp.sqrt(var + eps)[None, :, None, None]
         * gamma[None, :, None, None] + beta[None, :, None, None])
    if act:
        y = y * jax.nn.sigmoid(y)
    return y


# --------------------------------- main ------------------------------------

if __name__ == "__main__":
    key = jax.random.PRNGKey(0)
    ks = jax.random.split(key, 12)

    N, C1, H, W = 2, 4, 16, 16
    x = jax.random.normal(ks[0], (N, C1, H, W), jnp.float32)

    def make_params(kseq, c2, k):
        return dict(
            weight=jax.random.normal(kseq[0], (c2, C1, k, k), jnp.float32) * 0.2,
            gamma=1.0 + 0.1 * jax.random.normal(kseq[1], (c2,), jnp.float32),
            beta=0.05 * jax.random.normal(kseq[2], (c2,), jnp.float32),
            mean=0.05 * jax.random.normal(kseq[3], (c2,), jnp.float32),
            var=1.0 + 0.1 * jax.random.uniform(kseq[4], (c2,), jnp.float32),
        )

    # Conv(c1=4, c2=4, k=1) -- the module's default configuration.
    p1 = make_params(ks[1:6], 4, 1)
    out1 = jax.block_until_ready(conv_forward(x, **p1))
    ref1 = jax.block_until_ready(_reference_forward(x, **p1))
    assert out1.shape == (N, 4, H, W)
    err1 = jnp.max(jnp.abs(out1 - ref1))
    assert jnp.allclose(out1, ref1, rtol=2e-2, atol=2e-2), (
        f"k=1 max abs err = {err1}")

    # Conv(c1=4, c2=8, k=3) -- exercises the fused in-kernel 3x3 taps.
    p3 = make_params(ks[6:11], 8, 3)
    out3 = jax.block_until_ready(conv_forward(x, **p3))
    ref3 = jax.block_until_ready(_reference_forward(x, **p3))
    assert out3.shape == (N, 8, H, W)
    err3 = jnp.max(jnp.abs(out3 - ref3))
    assert jnp.allclose(out3, ref3, rtol=2e-2, atol=2e-2), (
        f"k=3 max abs err = {err3}")

    print("KERNEL_OK")
</pallas_src>

<mosaic_0001>
module attributes {stable_mosaic.version = 11 : i64} {
  func.func @_conv_bn_silu_kernel(%arg0: i32, %arg1: memref<1x16x16x128xbf16, #tpu.memory_space<vmem>>, %arg2: memref<1x128x128xbf16, #tpu.memory_space<vmem>>, %arg3: memref<1x128xf32, #tpu.memory_space<vmem>>, %arg4: memref<1x16x16x128xf32, #tpu.memory_space<vmem>>, %arg5: memref<256x128xf32, #tpu.memory_space<vmem>>) attributes {dimension_semantics = [#tpu.dimension_semantics<parallel>], iteration_bounds = array<i64: 2>, scalar_prefetch = 0 : i64, scratch_operands = 1 : i64, tpu.core_type = #tpu.core_type<tc>, window_params = [{transform_indices = @transform_0, window_bounds = array<i64: 1, 16, 16, 128>}, {pipeline_mode = #tpu.pipeline_mode<synchronous>, transform_indices = @transform_1, window_bounds = array<i64: 1, 128, 128>}, {pipeline_mode = #tpu.pipeline_mode<synchronous>, transform_indices = @transform_2, window_bounds = array<i64: 1, 128>}, {transform_indices = @transform_3, window_bounds = array<i64: 1, 16, 16, 128>}]} {
    %c0 = arith.constant 0 : index
    %c0_0 = arith.constant 0 : index
    %c0_1 = arith.constant 0 : index
    %c0_2 = arith.constant 0 : index
    %0 = vector.load %arg1[%c0, %c0_0, %c0_1, %c0_2] : memref<1x16x16x128xbf16, #tpu.memory_space<vmem>>, vector<1x16x16x128xbf16>
    %1 = vector.shape_cast %0 : vector<1x16x16x128xbf16> to vector<16x16x128xbf16>
    %2 = vector.shape_cast %1 : vector<16x16x128xbf16> to vector<256x128xbf16>
    %c0_3 = arith.constant 0 : index
    %c0_4 = arith.constant 0 : index
    %c0_5 = arith.constant 0 : index
    %3 = vector.load %arg2[%c0_3, %c0_4, %c0_5] : memref<1x128x128xbf16, #tpu.memory_space<vmem>>, vector<1x128x128xbf16>
    %4 = vector.shape_cast %3 : vector<1x128x128xbf16> to vector<128x128xbf16>
    %cst = arith.constant dense<0.000000e+00> : vector<256x128xf32>
    %5 = tpu.matmul %2, %4, %cst {dimension_numbers = #tpu.dot_dimension_numbers<[1], [0], [0], [1], [0, 0, 1, 1], [], []>} : vector<256x128xbf16>, vector<128x128xbf16>, vector<256x128xf32> -> vector<256x128xf32>
    %c0_6 = arith.constant 0 : index
    %c0_7 = arith.constant 0 : index
    %6 = vector.load %arg5[%c0_6, %c0_7] : memref<256x128xf32, #tpu.memory_space<vmem>>, vector<256x128xf32>
    tpu.vector_store %arg5[%c0_6, %c0_7], %5 {strides = array<i32>} : memref<256x128xf32, #tpu.memory_space<vmem>>, vector<256x128xf32>,
    %c0_8 = arith.constant 0 : index
    %c0_9 = arith.constant 0 : index
    %7 = vector.load %arg5[%c0_8, %c0_9] : memref<256x128xf32, #tpu.memory_space<vmem>>, vector<256x128xf32>
    %c0_10 = arith.constant 0 : index
    %c0_11 = arith.constant 0 : index
    %8 = vector.load %arg3[%c0_10, %c0_11] : memref<1x128xf32, #tpu.memory_space<vmem>>, vector<1x128xf32>
    %9 = vector.broadcast %8 : vector<1x128xf32> to vector<256x128xf32>
    %10 = arith.addf %7, %9 : vector<256x128xf32>
    %11 = arith.negf %10 : vector<256x128xf32>
    %12 = math.exp %11 : vector<256x128xf32>
    %cst_12 = arith.constant 1.000000e+00 : f32
    %13 = vector.broadcast %cst_12 : f32 to vector<256x128xf32>
    %14 = arith.addf %13, %12 : vector<256x128xf32>
    %15 = arith.divf %13, %14 : vector<256x128xf32>
    %16 = arith.mulf %10, %15 : vector<256x128xf32>
    %17 = vector.shape_cast %16 : vector<256x128xf32> to vector<1x16x16x128xf32>
    %c0_13 = arith.constant 0 : index
    %c0_14 = arith.constant 0 : index
    %c0_15 = arith.constant 0 : index
    %c0_16 = arith.constant 0 : index
    %18 = vector.load %arg4[%c0_13, %c0_14, %c0_15, %c0_16] : memref<1x16x16x128xf32, #tpu.memory_space<vmem>>, vector<1x16x16x128xf32>
    tpu.vector_store %arg4[%c0_13, %c0_14, %c0_15, %c0_16], %17 {strides = array<i32>} : memref<1x16x16x128xf32, #tpu.memory_space<vmem>>, vector<1x16x16x128xf32>,
    return
  }
  func.func @transform_0(%arg0: i32) -> (i32, i32, i32, i32) {
    %c0_i32 = arith.constant 0 : i32
    %c0_i32_0 = arith.constant 0 : i32
    %c0_i32_1 = arith.constant 0 : i32
    %c0_i32_2 = arith.constant 0 : i32
    return %arg0, %c0_i32, %c0_i32_0, %c0_i32_1 : i32, i32, i32, i32
  }
  func.func @transform_1(%arg0: i32) -> (i32, i32, i32) {
    %c0_i32 = arith.constant 0 : i32
    %c0_i32_0 = arith.constant 0 : i32
    %c0_i32_1 = arith.constant 0 : i32
    %c0_i32_2 = arith.constant 0 : i32
    return %c0_i32, %c0_i32_0, %c0_i32_1 : i32, i32, i32
  }
  func.func @transform_2(%arg0: i32) -> (i32, i32) {
    %c0_i32 = arith.constant 0 : i32
    %c0_i32_0 = arith.constant 0 : i32
    %c0_i32_1 = arith.constant 0 : i32
    return %c0_i32, %c0_i32_0 : i32, i32
  }
  func.func @transform_3(%arg0: i32) -> (i32, i32, i32, i32) {
    %c0_i32 = arith.constant 0 : i32
    %c0_i32_0 = arith.constant 0 : i32
    %c0_i32_1 = arith.constant 0 : i32
    %c0_i32_2 = arith.constant 0 : i32
    return %arg0, %c0_i32, %c0_i32_0, %c0_i32_1 : i32, i32, i32, i32
  }
}

</mosaic_0001>

<bundles_post_ra>
// kernel: conv_forward.1
= control target key start
LH: loop header
LB: loop body
LE: loop exit
PB: predicated region body
PF: predicated region fallthrough
CT: control target
= control target key end

     0   :  { %s1634_s12 = smov 0   ;;  %s2365_s0 = inlined_call_operand.vmem [shape: bf16[2,16,16,128], index: 0, kind: input, shape index: {}]   ;;  %s2366_s1 = inlined_call_operand.vmem [shape: bf16[1,128,128], index: 1, kind: input, shape index: {}]   ;;  %s2367_s2 = inlined_call_operand.vmem [shape: f32[1,128], index: 2, kind: input, shape index: {}]   ;;  %s2368_s3 = inlined_call_operand.vmem [shape: f32[2,16,16,128], index: 3, kind: output, shape index: {}]  }
   0x1 LB: > { %s1279_s13 = sadd.s32 4294967295, %s1612_s12   ;;  %p1283_p0 = scmp.ge.s32.totalorder %s1612_s12, 1  ;;  %s1612_s12 = sphi %s1634_s12, %s13_s12  }
   0x2   : > { %p137_p1 = scmp.lt.s32.totalorder %s1612_s12, 3 }
   0x4   : > { %p138_p2 = pnand %p1283_p0, %p137_p1 }
   0x5   : > { %p161_p3 = scmp.lt.s32.totalorder (!%p138_p2), %s1279_s13, 1 }
   0x6   : > { %141 = sbr.rel (%p138_p2) target bundleno = 331 (0x14b), region = 32 }
   0xb   : > { %v1443_v0 = vld [vmem:[%s2366_s1 + $0x38] sm:$0xff]  ;;  %v1442_v1 = vld [vmem:[%s2366_s1 + $0x30] sm:$0xff]  ;;  %v1441_v2 = vld [vmem:[%s2366_s1 + $0x28] sm:$0xff]  ;;  %s2424_s13 = smov (!%p161_p3, %s1279_s13), 1 }
   0xc   : > { %363 = vmatpush.bf16.msra.mxu0 %v1443_v0  ;;  %1444 = vmatpush.bf16.msra.mxu1 %v1443_v0  ;;  %v1440_v3 = vld [vmem:[%s2366_s1 + $0x20] sm:$0xff]  ;;  %v1439_v4 = vld [vmem:[%s2366_s1 + $0x18] sm:$0xff]  ;;  %v1438_v5 = vld [vmem:[%s2366_s1 + $0x10] sm:$0xff]  ;;  %s1418_s28 = sshll.u32 %s2424_s13, 7  ;;  %s1419_s9 = sshll.u32 %s2424_s13, 8 }
   0xd   : > { %1445 = vmatpush.bf16.msra.mxu2 %v1443_v0  ;;  %1446 = vmatpush.bf16.msra.mxu3 %v1443_v0  ;;  %v1437_v6 = vld [vmem:[%s2366_s1 + $0x8] sm:$0xff]  ;;  %v1436_v7 = vld [vmem:[%s2366_s1] sm:$0xff]  ;;  %s1676_s6 = scalar_lea.vmem %s2365_s0, %s1418_s28  ;;  %s1796_s13 = scalar_lea.vmem %s2368_s3, %s1419_s9 }
   0xe   : > { %v1420_v8 = vld [vmem:[%s1676_s6] sm:$0xff]  ;;  %v1421_v12 = vld [vmem:[%s1676_s6 + $0x8] sm:$0xff]  ;;  %v1422_v16 = vld [vmem:[%s1676_s6 + $0x10] sm:$0xff] }
   0xf   : > { %v1424_v9 = vld [vmem:[%s1676_s6 + $0x20] sm:$0xff]  ;;  %v1425_v13 = vld [vmem:[%s1676_s6 + $0x28] sm:$0xff]  ;;  %v1426_v17 = vld [vmem:[%s1676_s6 + $0x30] sm:$0xff] }
  0x10   : > { %364 = vmatpush.bf16.msra.mxu0 %v1442_v1  ;;  %1447 = vmatpush.bf16.msra.mxu1 %v1442_v1  ;;  %v1428_v10 = vld [vmem:[%s1676_s6 + $0x40] sm:$0xff]  ;;  %v1429_v14 = vld [vmem:[%s1676_s6 + $0x48] sm:$0xff]  ;;  %v1430_v18 = vld [vmem:[%s1676_s6 + $0x50] sm:$0xff] }
  0x11   : > { %1448 = vmatpush.bf16.msra.mxu2 %v1442_v1  ;;  %1449 = vmatpush.bf16.msra.mxu3 %v1442_v1  ;;  %v1432_v11 = vld [vmem:[%s1676_s6 + $0x60] sm:$0xff]  ;;  %v1433_v15 = vld [vmem:[%s1676_s6 + $0x68] sm:$0xff]  ;;  %v1434_v19 = vld [vmem:[%s1676_s6 + $0x70] sm:$0xff] }
  0x12   : > { %v1423_v20 = vld [vmem:[%s1676_s6 + $0x18] sm:$0xff]  ;;  %v1697_v24 = vld [vmem:[%s2367_s2] ss:$0 sm:$0xff] }
  0x13   : > { %v1427_v21 = vld [vmem:[%s1676_s6 + $0x38] sm:$0xff] }
  0x14   : > { %365 = vmatpush.bf16.msra.mxu0 %v1441_v2  ;;  %1450 = vmatpush.bf16.msra.mxu1 %v1441_v2  ;;  %v1431_v22 = vld [vmem:[%s1676_s6 + $0x58] sm:$0xff] }
  0x15   : > { %1451 = vmatpush.bf16.msra.mxu2 %v1441_v2  ;;  %1452 = vmatpush.bf16.msra.mxu3 %v1441_v2  ;;  %v1435_v23 = vld [vmem:[%s1676_s6 + $0x78] sm:$0xff] }
  0x18   : > { %366 = vmatpush.bf16.msra.mxu0 %v1440_v3  ;;  %1453 = vmatpush.bf16.msra.mxu1 %v1440_v3 }
  0x19   : > { %1454 = vmatpush.bf16.msra.mxu2 %v1440_v3  ;;  %1455 = vmatpush.bf16.msra.mxu3 %v1440_v3 }
  0x1c   : > { %367 = vmatpush.bf16.msra.mxu0 %v1439_v4  ;;  %1456 = vmatpush.bf16.msra.mxu1 %v1439_v4 }
  0x1d   : > { %1457 = vmatpush.bf16.msra.mxu2 %v1439_v4  ;;  %1458 = vmatpush.bf16.msra.mxu3 %v1439_v4 }
  0x20   : > { %368 = vmatpush.bf16.msra.mxu0 %v1438_v5  ;;  %1459 = vmatpush.bf16.msra.mxu1 %v1438_v5 }
  0x21   : > { %1460 = vmatpush.bf16.msra.mxu2 %v1438_v5  ;;  %1461 = vmatpush.bf16.msra.mxu3 %v1438_v5 }
  0x24   : > { %369 = vmatpush.bf16.msra.mxu0 %v1437_v6  ;;  %1462 = vmatpush.bf16.msra.mxu1 %v1437_v6 }
  0x25   : > { %1463 = vmatpush.bf16.msra.mxu2 %v1437_v6  ;;  %1464 = vmatpush.bf16.msra.mxu3 %v1437_v6 }
  0x28   : > { %370 = vmatpush.bf16.msra.mxu0 %v1436_v7  ;;  %1465 = vmatpush.bf16.msra.mxu1 %v1436_v7 }
  0x29   : > { %1466 = vmatpush.bf16.msra.mxu2 %v1436_v7  ;;  %1467 = vmatpush.bf16.msra.mxu3 %v1436_v7 }
  0x2b   : > { %371 = vmatmul.bf16.vlgmr.msra.gmra.mxu0 %v1420_v8  ;;  %391 = vmatmul.bf16.vlgmr.msra.gmra.mxu1 %v1424_v9 }
  0x2c   : > { %411 = vmatmul.bf16.vlgmr.msra.gmra.mxu2 %v1428_v10  ;;  %431 = vmatmul.bf16.vlgmr.msra.gmra.mxu3 %v1432_v11 }
  0x3b   : > { %376 = vmatmul.bf16.gmra.mxu0 %v1421_v12  ;;  %396 = vmatmul.bf16.gmra.mxu1 %v1425_v13 }
  0x3c   : > { %416 = vmatmul.bf16.gmra.mxu2 %v1429_v14  ;;  %436 = vmatmul.bf16.gmra.mxu3 %v1433_v15 }
  0x4b   : > { %381 = vmatmul.bf16.gmra.mxu0 %v1422_v16  ;;  %401 = vmatmul.bf16.gmra.mxu1 %v1426_v17 }
  0x4c   : > { %421 = vmatmul.bf16.gmra.mxu2 %v1430_v18  ;;  %441 = vmatmul.bf16.gmra.mxu3 %v1434_v19 }
  0x5b   : > { %386 = vmatmul.bf16.gmra.mxu0 %v1423_v20  ;;  %406 = vmatmul.bf16.gmra.mxu1 %v1427_v21 }
  0x5c   : > { %426 = vmatmul.bf16.gmra.mxu2 %v1431_v22  ;;  %446 = vmatmul.bf16.gmra.mxu3 %v1435_v23 }
  0xa8   : > { %v372_v25 = vpop.f32.mrf.mxu0  ;;  %v392_v26 = vpop.f32.mrf.mxu1 }
  0xa9   : > { %v1700_v27 = vadd.f32 %v1697_v24, %v372_v25  ;;  %v1703_v28 = vadd.f32 %v1697_v24, %v392_v26 }
  0xab   : > { %v1384_v29 = vmul.f32 -1.442695, %v1700_v27  ;;  %v1392_v30 = vmul.f32 -1.442695, %v1703_v28 }
  0xad   : > { %1477 = vpow2.f32 %v1384_v29 }
  0xae   : > { %1479 = vpow2.f32 %v1392_v30 }
  0xaf   : > { %v412_v31 = vpop.f32.mrf.mxu2  ;;  %v432_v32 = vpop.f32.mrf.mxu3 }
  0xb0   : > { %v1708_v33 = vadd.f32 %v1697_v24, %v412_v31  ;;  %v1711_v34 = vadd.f32 %v1697_v24, %v432_v32  ;;  %v374_v35 = vpop.f32.mrf.mxu0  ;;  %v394_v36 = vpop.f32.mrf.mxu1 }
  0xb1   : > { %v1714_v37 = vadd.f32 %v1697_v24, %v374_v35  ;;  %v1717_v38 = vadd.f32 %v1697_v24, %v394_v36 }
  0xb2   : > { %v1400_v39 = vmul.f32 -1.442695, %v1708_v33  ;;  %v1408_v40 = vmul.f32 -1.442695, %v1711_v34 }
  0xb3   : > { %v1478_v41 = vpop.eup %1477  ;;  %v1385_v44 = vmul.f32 -1.442695, %v1714_v37  ;;  %v1393_v46 = vmul.f32 -1.442695, %v1717_v38 }
  0xb4   : > { %v1480_v42 = vpop.eup %1479  ;;  %v1721_v43 = vadd.f32 1.0, %v1478_v41  ;;  %1481 = vpow2.f32 %v1400_v39 }
  0xb5   : > { %v1724_v45 = vadd.f32 1.0, %v1480_v42  ;;  %1483 = vpow2.f32 %v1408_v40 }
  0xb6   : > { %1485 = vrcp.f32 %v1721_v43  ;;  %v689_v51 = vand.u32 2147483647, %v1721_v43  ;;  %v691_v52 = vand.u32 2147483648, %v1721_v43  ;;  %vm685_vm0 = vweird.f32 %v1721_v43 }
  0xb7   : > { %1487 = vrcp.f32 %v1724_v45  ;;  %v414_v47 = vpop.f32.mrf.mxu2  ;;  %v434_v48 = vpop.f32.mrf.mxu3  ;;  %v809_v54 = vand.u32 2147483647, %v1724_v45  ;;  %v811_v55 = vand.u32 2147483648, %v1724_v45  ;;  %vm805_vm1 = vweird.f32 %v1724_v45 }
  0xb8   : > { %1489 = vpow2.f32 %v1385_v44  ;;  %v1730_v49 = vadd.f32 %v1697_v24, %v414_v47  ;;  %v377_v50 = vpop.f32.mrf.mxu0  ;;  %v1738_v57 = vadd.f32 %v1697_v24, %v434_v48  ;;  %v397_v63 = vpop.f32.mrf.mxu1  ;;  %vm1750_vm2 = vcmp.eq.f32.partialorder %v689_v51, 8.507059e+37 }
  0xb9   : > { %1491 = vpow2.f32 %v1393_v46  ;;  %v1743_v60 = vadd.f32 %v1697_v24, %v377_v50  ;;  %v692_v3 = vor.u32 1.1754944e-38, %v691_v52  ;;  %vm1756_vm3 = vcmp.eq.f32.partialorder %v809_v54, 8.507059e+37 }
  0xba   : > { %v1482_v53 = vpop.eup %1481  ;;  %v1401_v56 = vmul.f32 -1.442695, %v1730_v49  ;;  %v812_v7 = vor.u32 1.1754944e-38, %v811_v55  ;;  %v1409_v8 = vmul.f32 -1.442695, %v1738_v57  ;;  %v1764_v12 = vadd.f32 %v1697_v24, %v397_v63 }
  0xbb   : > { %v1484_v58 = vpop.eup %1483  ;;  %v1740_v59 = vadd.f32 1.0, %v1482_v53  ;;  %v1386_v11 = vmul.f32 -1.442695, %v1743_v60 }
  0xbc   : > { %v1486_v61 = vpop.eup %1485  ;;  %v1747_v62 = vadd.f32 1.0, %v1484_v58  ;;  %v1778_v25 = vmul.f32 -1.442695, %v1764_v12 }
  0xbd   : > { %v1488_v0 = vpop.eup %1487  ;;  %v681_v1 = vmul.f32 %v1486_v61, %v1721_v43  ;;  %1493 = vrcp.f32 %v1740_v59  ;;  %vm686_vm4 = vweird.f32 %v1486_v61  ;;  %v929_v14 = vand.u32 2147483647, %v1740_v59 }
  0xbe   : > { %v1490_v4 = vpop.eup %1489  ;;  %v801_v5 = vmul.f32 %v1488_v0, %v1724_v45  ;;  %1495 = vpow2.f32 %v1401_v56  ;;  %v931_v15 = vand.u32 2147483648, %v1740_v59  ;;  %v1051_v17 = vand.u32 2147483648, %v1747_v62  ;;  %vm687_vm7 = vmor %vm685_vm0, %vm686_vm4 }
  0xbf   : > { %v1492_v9 = vpop.eup %1491  ;;  %v682_v10 = vsub.f32 1.0, %v681_v1  ;;  %1497 = vrcp.f32 %v1747_v62  ;;  %v1769_v18 = vadd.f32 1.0, %v1490_v4  ;;  %vm806_vm5 = vweird.f32 %v1488_v0  ;;  %v417_v32 = vpop.f32.mrf.mxu2 }
  0xc0   : > { %v802_v13 = vsub.f32 1.0, %v801_v5  ;;  %v1771_v19 = vadd.f32 1.0, %v1492_v9  ;;  %v1049_v21 = vand.u32 2147483647, %v1747_v62  ;;  %1499 = vpow2.f32 %v1409_v8  ;;  %vm807_vm10 = vmor %vm805_vm1, %vm806_vm5 }
  0xc1   : > { %v683_v16 = vmul.f32 %v1486_v61, %v682_v10  ;;  %vm925_vm6 = vweird.f32 %v1740_v59  ;;  %1501 = vrcp.f32 %v1769_v18  ;;  %vm1784_vm8 = vcmp.eq.f32.partialorder %v929_v14, 8.507059e+37 }
  0xc2   : > { %v803_v20 = vmul.f32 %v1488_v0, %v802_v13  ;;  %vm1045_vm9 = vweird.f32 %v1747_v62  ;;  %v932_v39 = vor.u32 1.1754944e-38, %v931_v15  ;;  %v1052_v40 = vor.u32 1.1754944e-38, %v1051_v17 }
  0xc3   : > { %v1494_v22 = vpop.eup %1493  ;;  %v684_v23 = vadd.f32 %v1486_v61, %v683_v16  ;;  %1503 = vrcp.f32 %v1771_v19  ;;  %vm1801_vm11 = vcmp.eq.f32.partialorder %v1049_v21, 8.507059e+37  ;;  %v704_v48 = vand.u32 2147483647, %v1769_v18 }
  0xc4   : > { %v1496_v26 = vpop.eup %1495  ;;  %v804_v29 = vadd.f32 %v1488_v0, %v803_v20  ;;  %v921_v30 = vmul.f32 %v1494_v22, %v1740_v59  ;;  %v1810_v50 = vadd.f32 %v1697_v24, %v417_v32  ;;  %vm926_vm12 = vweird.f32 %v1494_v22  ;;  %v437_v20 = vpop.f32.mrf.mxu3 }
  0xc5   : > { %v1498_v35 = vpop.eup %1497  ;;  %v688_v36 = vsel %vm687_vm7, %v1486_v61, %v684_v23  ;;  %vm700_vm13 = vweird.f32 %v1769_v18  ;;  %v1816_v56 = vadd.f32 1.0, %v1496_v26  ;;  %1505 = vpow2.f32 %v1386_v11  ;;  %vm927_vm15 = vmor %vm925_vm6, %vm926_vm12 }
  0xc6   : > { %v693_v41 = vsel %vm1750_vm2, %v692_v3, %v688_v36  ;;  %v808_v42 = vsel %vm807_vm10, %v1488_v0, %v804_v29  ;;  %v922_v43 = vsub.f32 1.0, %v921_v30  ;;  %v1041_v44 = vmul.f32 %v1498_v35, %v1747_v62  ;;  %v1500_v51 = vpop.eup %1499 }
  0xc7   : > { %v1160_v46 = vmul.f32 %v693_v41, %v1700_v27  ;;  %v813_v47 = vsel %vm1756_vm3, %v812_v7, %v808_v42  ;;  %v1502_v55 = vpop.eup %1501  ;;  %v706_v27 = vand.u32 2147483648, %v1769_v18  ;;  %vm1046_vm14 = vweird.f32 %v1498_v35 }
  0xc8   : > { %v1168_v52 = vmul.f32 %v813_v47, %v1703_v28  ;;  %v923_v53 = vmul.f32 %v1494_v22, %v922_v43  ;;  %v1042_v54 = vsub.f32 1.0, %v1041_v44  ;;  %v696_v63 = vmul.f32 %v1502_v55, %v1769_v18  ;;  %vm1047_vm1 = vmor %vm1045_vm9, %vm1046_vm14  ;;  %v399_v47 = vpop.f32.mrf.mxu1 }
  0xc9   : > { %1192 = vst [vmem:[%s1796_s13] sm:$0xff] %v1160_v46  ;;  %v1504_v0 = vpop.eup %1503  ;;  %vm1822_vm0 = vcmp.eq.f32.partialorder %v704_v48, 8.507059e+37  ;;  %v824_v1 = vand.u32 2147483647, %v1771_v19  ;;  %1507 = vrcp.f32 %v1816_v56  ;;  %v1828_v2 = vadd.f32 1.0, %v1500_v51 }
  0xca   : > { %1200 = vst [vmem:[%s1796_s13 + $0x40] sm:$0xff] %v1168_v52  ;;  %v924_v58 = vadd.f32 %v1494_v22, %v923_v53  ;;  %v1043_v61 = vmul.f32 %v1498_v35, %v1042_v54  ;;  %v697_v5 = vsub.f32 1.0, %v696_v63  ;;  %v816_v6 = vmul.f32 %v1504_v0, %v1771_v19 }
  0xcb   : > { %vm701_vm2 = vweird.f32 %v1502_v55  ;;  %vm820_vm3 = vweird.f32 %v1771_v19  ;;  %v826_v7 = vand.u32 2147483648, %v1771_v19  ;;  %v1506_v13 = vpop.eup %1505  ;;  %v707_v15 = vor.u32 1.1754944e-38, %v706_v27  ;;  %v419_v27 = vpop.f32.mrf.mxu2 }
  0xcc   : > { %v928_v3 = vsel %vm927_vm15, %v1494_v22, %v924_v58  ;;  %v1044_v4 = vadd.f32 %v1498_v35, %v1043_v61  ;;  %v698_v10 = vmul.f32 %v1502_v55, %v697_v5  ;;  %v817_v11 = vsub.f32 1.0, %v816_v6  ;;  %vm702_vm6 = vmor %vm700_vm13, %vm701_vm2 }
  0xcd   : > { %v933_v59 = vsel %vm1784_vm8, %v932_v39, %v928_v3  ;;  %vm1840_vm4 = vcmp.eq.f32.partialorder %v824_v1, 8.507059e+37  ;;  %1509 = vrcp.f32 %v1828_v2  ;;  %vm821_vm5 = vweird.f32 %v1504_v0 }
  0xce   : > { %v1176_v8 = vmul.f32 %v933_v59, %v1708_v33  ;;  %v1048_v9 = vsel %vm1047_vm1, %v1498_v35, %v1044_v4  ;;  %v699_v17 = vadd.f32 %v1502_v55, %v698_v10  ;;  %v818_v33 = vmul.f32 %v1504_v0, %v817_v11  ;;  %vm822_vm7 = vmor %vm820_vm3, %vm821_vm5  ;;  %v439_v4 = vpop.f32.mrf.mxu3 }
  0xcf   : > { %v1053_v14 = vsel %vm1801_vm11, %v1052_v40, %v1048_v9  ;;  %v1508_v21 = vpop.eup %1507  ;;  %v944_v22 = vand.u32 2147483647, %v1816_v56  ;;  %v946_v23 = vand.u32 2147483648, %v1816_v56  ;;  %v1852_v26 = vadd.f32 1.0, %v1506_v13  ;;  %v379_v40 = vpop.f32.mrf.mxu0 }
  0xd0   : > { %1208 = vst [vmem:[%s1796_s13 + $0x80] sm:$0xff] %v1176_v8  ;;  %v1184_v62 = vmul.f32 %v1053_v14, %v1711_v34  ;;  %1511 = vpow2.f32 %v1778_v25  ;;  %v703_v29 = vsel %vm702_vm6, %v1502_v55, %v699_v17  ;;  %v819_v34 = vadd.f32 %v1504_v0, %v818_v33 }
  0xd1   : > { %v827_v30 = vor.u32 1.1754944e-38, %v826_v7  ;;  %v936_v31 = vmul.f32 %v1508_v21, %v1816_v56  ;;  %v708_v32 = vsel %vm1822_vm0, %v707_v15, %v703_v29  ;;  %vm940_vm8 = vweird.f32 %v1816_v56 }
  0xd2   : > { %1216 = vst [vmem:[%s1796_s13 + $0xc0] sm:$0xff] %v1184_v62  ;;  %v1064_v18 = vand.u32 2147483647, %v1828_v2  ;;  %1513 = vrcp.f32 %v1852_v26  ;;  %v1161_v25 = vmul.f32 %v708_v32, %v1714_v37  ;;  %v823_v35 = vsel %vm822_vm7, %v1504_v0, %v819_v34 }
  0xd3   : > { %v937_v36 = vsub.f32 1.0, %v936_v31  ;;  %v1066_v39 = vand.u32 2147483648, %v1828_v2  ;;  %v1510_v41 = vpop.eup %1509  ;;  %v828_v42 = vsel %vm1840_vm4, %v827_v30, %v823_v35  ;;  %vm1868_vm9 = vcmp.eq.f32.partialorder %v944_v22, 8.507059e+37  ;;  %v422_v51 = vpop.f32.mrf.mxu2 }
  0xd4   : > { %v947_v43 = vor.u32 1.1754944e-38, %v946_v23  ;;  %v1402_v44 = vmul.f32 -1.442695, %v1810_v50  ;;  %1193 = vst [vmem:[%s1796_s13 + $0x8] sm:$0xff] %v1161_v25  ;;  %v1169_v37 = vmul.f32 %v828_v42, %v1717_v38  ;;  %vm941_vm10 = vweird.f32 %v1508_v21 }
  0xd5   : > { %v938_v45 = vmul.f32 %v1508_v21, %v937_v36  ;;  %v1056_v46 = vmul.f32 %v1510_v41, %v1828_v2  ;;  %vm1060_vm11 = vweird.f32 %v1828_v2  ;;  %vm1877_vm12 = vcmp.eq.f32.partialorder %v1064_v18, 8.507059e+37  ;;  %vm942_vm13 = vmor %vm940_vm8, %vm941_vm10 }
  0xd6   : > { %v1512_v48 = vpop.eup %1511  ;;  %1515 = vpow2.f32 %v1402_v44  ;;  %v1882_v52 = vadd.f32 %v1697_v24, %v437_v20  ;;  %1201 = vst [vmem:[%s1796_s13 + $0x48] sm:$0xff] %v1169_v37  ;;  %v1067_v38 = vor.u32 1.1754944e-38, %v1066_v39  ;;  %vm715_vm14 = vweird.f32 %v1852_v26 }
  0xd7   : > { %v939_v53 = vadd.f32 %v1508_v21, %v938_v45  ;;  %v1057_v54 = vsub.f32 1.0, %v1056_v46  ;;  %v1885_v55 = vadd.f32 1.0, %v1512_v48  ;;  %v1893_v63 = vadd.f32 %v1697_v24, %v379_v40  ;;  %v382_v62 = vpop.f32.mrf.mxu0 }
  0xd8   : > { %v1514_v58 = vpop.eup %1513  ;;  %v1410_v61 = vmul.f32 -1.442695, %v1882_v52  ;;  %v1896_v0 = vadd.f32 %v1697_v24, %v399_v47  ;;  %vm1061_vm15 = vweird.f32 %v1510_v41  ;;  %v721_v5 = vand.u32 2147483648, %v1852_v26 }
  0xd9   : > { %v943_v28 = vsel %vm942_vm13, %v1508_v21, %v939_v53  ;;  %v1058_v1 = vmul.f32 %v1510_v41, %v1057_v54  ;;  %v711_v3 = vmul.f32 %v1514_v58, %v1852_v26  ;;  %1517 = vrcp.f32 %v1885_v55  ;;  %vm1062_vm0 = vmor %vm1060_vm11, %vm1061_vm15  ;;  %v442_v53 = vpop.f32.mrf.mxu3 }
  0xda   : > { %v948_v56 = vsel %vm1868_vm9, %v947_v43, %v943_v28  ;;  %v1904_v6 = vadd.f32 %v1697_v24, %v419_v27  ;;  %v719_v9 = vand.u32 2147483647, %v1852_v26  ;;  %1519 = vpow2.f32 %v1410_v61  ;;  %v402_v43 = vpop.f32.mrf.mxu1 }
  0xdb   : > { %v1177_v59 = vmul.f32 %v948_v56, %v1730_v49  ;;  %v1059_v7 = vadd.f32 %v1510_v41, %v1058_v1  ;;  %v712_v8 = vsub.f32 1.0, %v711_v3  ;;  %v1387_v11 = vmul.f32 -1.442695, %v1893_v63 }
  0xdc   : > { %v1516_v10 = vpop.eup %1515  ;;  %v1395_v13 = vmul.f32 -1.442695, %v1896_v0  ;;  %v1913_v14 = vadd.f32 %v1697_v24, %v439_v4  ;;  %vm716_vm1 = vweird.f32 %v1514_v58  ;;  %v722_v17 = vor.u32 1.1754944e-38, %v721_v5 }
  0xdd   : > { %1209 = vst [vmem:[%s1796_s13 + $0x88] sm:$0xff] %v1177_v59  ;;  %v1063_v15 = vsel %vm1062_vm0, %v1510_v41, %v1059_v7  ;;  %v713_v16 = vmul.f32 %v1514_v58, %v712_v8  ;;  %v1916_v49 = vadd.f32 1.0, %v1516_v10  ;;  %1521 = vpow2.f32 %v1387_v11  ;;  %vm717_vm2 = vmor %vm715_vm14, %vm716_vm1 }
  0xde   : > { %v1068_v2 = vsel %vm1877_vm12, %v1067_v38, %v1063_v15  ;;  %v1403_v33 = vmul.f32 -1.442695, %v1904_v6  ;;  %v839_v22 = vand.u32 2147483647, %v1885_v55  ;;  %v841_v29 = vand.u32 2147483648, %v1885_v55 }
  0xdf   : > { %v1185_v20 = vmul.f32 %v1068_v2, %v1738_v57  ;;  %v714_v21 = vadd.f32 %v1514_v58, %v713_v16  ;;  %1523 = vrcp.f32 %v1916_v49  ;;  %v1518_v23 = vpop.eup %1517  ;;  %v1411_v34 = vmul.f32 -1.442695, %v1913_v14  ;;  %v384_v3 = vpop.f32.mrf.mxu0 }
  0xe0   : > { %1525 = vpow2.f32 %v1395_v13  ;;  %v1929_v30 = vadd.f32 %v1697_v24, %v382_v62  ;;  %vm720_vm3 = vcmp.eq.f32.partialorder %v719_v9, 8.507059e+37  ;;  %v831_v57 = vmul.f32 %v1518_v23, %v1885_v55  ;;  %v1520_v32 = vpop.eup %1519 }
  0xe1   : > { %1217 = vst [vmem:[%s1796_s13 + $0xc8] sm:$0xff] %v1185_v20  ;;  %v718_v31 = vsel %vm717_vm2, %v1514_v58, %v714_v21  ;;  %v959_v25 = vand.u32 2147483647, %v1916_v49  ;;  %v961_v26 = vand.u32 2147483648, %v1916_v49  ;;  %1527 = vpow2.f32 %v1403_v33 }
  0xe2   : > { %v723_v18 = vsel %vm720_vm3, %v722_v17, %v718_v31  ;;  %v832_v36 = vsub.f32 1.0, %v831_v57  ;;  %v1936_v39 = vadd.f32 1.0, %v1520_v32  ;;  %v1388_v40 = vmul.f32 -1.442695, %v1929_v30 }
  0xe3   : > { %v1162_v35 = vmul.f32 %v723_v18, %v1743_v60  ;;  %v1522_v41 = vpop.eup %1521  ;;  %vm835_vm4 = vweird.f32 %v1885_v55  ;;  %vm1940_vm5 = vcmp.eq.f32.partialorder %v839_v22, 8.507059e+37  ;;  %v842_v19 = vor.u32 1.1754944e-38, %v841_v29 }
  0xe4   : > { %1529 = vpow2.f32 %v1411_v34  ;;  %v833_v37 = vmul.f32 %v1518_v23, %v832_v36  ;;  %vm836_vm6 = vweird.f32 %v1518_v23  ;;  %vm955_vm7 = vweird.f32 %v1916_v49 }
  0xe5   : > { %v1524_v44 = vpop.eup %1523  ;;  %1194 = vst [vmem:[%s1796_s13 + $0x10] sm:$0xff] %v1162_v35  ;;  %1531 = vrcp.f32 %v1936_v39  ;;  %vm1948_vm8 = vcmp.eq.f32.partialorder %v959_v25, 8.507059e+37  ;;  %v962_v47 = vor.u32 1.1754944e-38, %v961_v26  ;;  %v1952_v48 = vadd.f32 1.0, %v1522_v41  ;;  %vm837_vm9 = vmor %vm835_vm4, %vm836_vm6 }
  0xe6   : > { %v1526_v60 = vpop.eup %1525  ;;  %v951_v45 = vmul.f32 %v1524_v44, %v1916_v49  ;;  %v834_v54 = vadd.f32 %v1518_v23, %v833_v37  ;;  %1533 = vpow2.f32 %v1388_v40  ;;  %v1957_v27 = vadd.f32 %v1697_v24, %v402_v43 }
  0xe7   : > { %v1954_v38 = vadd.f32 1.0, %v1526_v60  ;;  %v1528_v58 = vpop.eup %1527  ;;  %v1079_v28 = vand.u32 2147483647, %v1936_v39  ;;  %v1081_v1 = vand.u32 2147483648, %v1936_v39  ;;  %1535 = vrcp.f32 %v1952_v48 }
  0xe8   : > { %v952_v61 = vsub.f32 1.0, %v951_v45  ;;  %v838_v4 = vsel %vm837_vm9, %v1518_v23, %v834_v54  ;;  %v1967_v56 = vadd.f32 %v1697_v24, %v422_v51  ;;  %v1970_v5 = vadd.f32 %v1697_v24, %v442_v53 }
  0xe9   : > { %1537 = vrcp.f32 %v1954_v38  ;;  %v843_v59 = vsel %vm1940_vm5, %v842_v19, %v838_v4  ;;  %vm956_vm10 = vweird.f32 %v1524_v44  ;;  %v736_v8 = vand.u32 2147483648, %v1952_v48 }
  0xea   : > { %v1530_v55 = vpop.eup %1529  ;;  %v953_v7 = vmul.f32 %v1524_v44, %v952_v61  ;;  %v1170_v10 = vmul.f32 %v843_v59, %v1764_v12  ;;  %vm1075_vm11 = vweird.f32 %v1936_v39  ;;  %v734_v11 = vand.u32 2147483647, %v1952_v48  ;;  %vm957_vm13 = vmor %vm955_vm7, %vm956_vm10 }
  0xeb   : > { %v1532_v9 = vpop.eup %1531  ;;  %v1979_v13 = vadd.f32 %v1697_v24, %v384_v3  ;;  %vm1982_vm12 = vcmp.eq.f32.partialorder %v1079_v28, 8.507059e+37  ;;  %v1082_v2 = vor.u32 1.1754944e-38, %v1081_v1  ;;  %vm730_vm14 = vweird.f32 %v1952_v48 }
  0xec   : > { %v954_v15 = vadd.f32 %v1524_v44, %v953_v7  ;;  %v1071_v16 = vmul.f32 %v1532_v9, %v1936_v39  ;;  %v1534_v17 = vpop.eup %1533  ;;  %1202 = vst [vmem:[%s1796_s13 + $0x50] sm:$0xff] %v1170_v10  ;;  %v854_v12 = vand.u32 2147483647, %v1954_v38  ;;  %v856_v33 = vand.u32 2147483648, %v1954_v38  ;;  %v404_v10 = vpop.f32.mrf.mxu1 }
  0xed   : > { %v1992_v20 = vadd.f32 1.0, %v1528_v58  ;;  %v1536_v21 = vpop.eup %1535  ;;  %v737_v29 = vor.u32 1.1754944e-38, %v736_v8  ;;  %vm850_vm15 = vweird.f32 %v1954_v38  ;;  %v1995_v34 = vadd.f32 1.0, %v1530_v55 }
  0xee   : > { %v958_v22 = vsel %vm957_vm13, %v1524_v44, %v954_v15  ;;  %v1072_v23 = vsub.f32 1.0, %v1071_v16  ;;  %vm1076_vm0 = vweird.f32 %v1532_v9  ;;  %v726_v57 = vmul.f32 %v1536_v21, %v1952_v48 }
  0xef   : > { %v1538_v31 = vpop.eup %1537  ;;  %v963_v49 = vsel %vm1948_vm8, %v962_v47, %v958_v22  ;;  %vm2000_vm1 = vcmp.eq.f32.partialorder %v734_v11, 8.507059e+37  ;;  %1539 = vrcp.f32 %v1992_v20  ;;  %v2007_v35 = vadd.f32 1.0, %v1534_v17  ;;  %vm1077_vm3 = vmor %vm1075_vm11, %vm1076_vm0 }
  0xf0   : > { %v1178_v18 = vmul.f32 %v963_v49, %v1810_v50  ;;  %v1073_v25 = vmul.f32 %v1532_v9, %v1072_v23  ;;  %v846_v26 = vmul.f32 %v1538_v31, %v1954_v38  ;;  %v727_v36 = vsub.f32 1.0, %v726_v57 }
  0xf1   : > { %vm2009_vm2 = vcmp.eq.f32.partialorder %v854_v12, 8.507059e+37  ;;  %v857_v41 = vor.u32 1.1754944e-38, %v856_v33  ;;  %v1396_v42 = vmul.f32 -1.442695, %v1957_v27  ;;  %v974_v44 = vand.u32 2147483647, %v1992_v20  ;;  %v444_v33 = vpop.f32.mrf.mxu3 }
  0xf2   : > { %1210 = vst [vmem:[%s1796_s13 + $0x90] sm:$0xff] %v1178_v18  ;;  %v1074_v19 = vadd.f32 %v1532_v9, %v1073_v25  ;;  %v847_v43 = vsub.f32 1.0, %v846_v26  ;;  %1541 = vrcp.f32 %v1995_v34  ;;  %v728_v50 = vmul.f32 %v1536_v21, %v727_v36 }
  0xf3   : > { %vm731_vm4 = vweird.f32 %v1536_v21  ;;  %v976_v37 = vand.u32 2147483648, %v1992_v20  ;;  %v1404_v60 = vmul.f32 -1.442695, %v1967_v56  ;;  %vm851_vm5 = vweird.f32 %v1538_v31 }
  0xf4   : > { %v1078_v45 = vsel %vm1077_vm3, %v1532_v9, %v1074_v19  ;;  %v848_v46 = vmul.f32 %v1538_v31, %v847_v43  ;;  %1543 = vrcp.f32 %v2007_v35  ;;  %v729_v53 = vadd.f32 %v1536_v21, %v728_v50  ;;  %vm732_vm7 = vmor %vm730_vm14, %vm731_vm4 }
  0xf5   : > { %v1540_v47 = vpop.eup %1539  ;;  %v1083_v51 = vsel %vm1982_vm12, %v1082_v2, %v1078_v45  ;;  %vm970_vm6 = vweird.f32 %v1992_v20  ;;  %v1094_v39 = vand.u32 2147483647, %v1995_v34  ;;  %vm2031_vm8 = vcmp.eq.f32.partialorder %v974_v44, 8.507059e+37  ;;  %vm852_vm9 = vmor %vm850_vm15, %vm851_vm5  ;;  %v424_v2 = vpop.f32.mrf.mxu2 }
  0xf6   : > { %v1186_v54 = vmul.f32 %v1083_v51, %v1882_v52  ;;  %v849_v58 = vadd.f32 %v1538_v31, %v848_v46  ;;  %v966_v61 = vmul.f32 %v1540_v47, %v1992_v20  ;;  %v733_v1 = vsel %vm732_vm7, %v1536_v21, %v729_v53 }
  0xf7   : > { %v977_v3 = vor.u32 1.1754944e-38, %v976_v37  ;;  %vm1090_vm10 = vweird.f32 %v1995_v34  ;;  %v1096_v4 = vand.u32 2147483648, %v1995_v34  ;;  %vm745_vm11 = vweird.f32 %v2007_v35 }
  0xf8   : > { %v1542_v52 = vpop.eup %1541  ;;  %1218 = vst [vmem:[%s1796_s13 + $0xd0] sm:$0xff] %v1186_v54  ;;  %v738_v48 = vsel %vm2000_vm1, %v737_v29, %v733_v1  ;;  %v853_v55 = vsel %vm852_vm9, %v1538_v31, %v849_v58  ;;  %v967_v59 = vsub.f32 1.0, %v966_v61  ;;  %1545 = vpow2.f32 %v1396_v42  ;;  %v407_v1 = vpop.f32.mrf.mxu1 }
  0xf9   : > { %v1163_v7 = vmul.f32 %v738_v48, %v1893_v63  ;;  %v858_v38 = vsel %vm2009_vm2, %v857_v41, %v853_v55  ;;  %vm971_vm12 = vweird.f32 %v1540_v47  ;;  %v1086_v8 = vmul.f32 %v1542_v52, %v1995_v34  ;;  %v387_v41 = vpop.f32.mrf.mxu0 }
  0xfa   : > { %vm2047_vm13 = vcmp.eq.f32.partialorder %v1094_v39, 8.507059e+37  ;;  %v1544_v11 = vpop.eup %1543  ;;  %v1171_v15 = vmul.f32 %v858_v38, %v1896_v0  ;;  %v968_v16 = vmul.f32 %v1540_v47, %v967_v59  ;;  %v749_v62 = vand.u32 2147483647, %v2007_v35  ;;  %vm972_vm15 = vmor %vm970_vm6, %vm971_vm12 }
  0xfb   : > { %v751_v63 = vand.u32 2147483648, %v2007_v35  ;;  %1195 = vst [vmem:[%s1796_s13 + $0x18] sm:$0xff] %v1163_v7  ;;  %v1087_v17 = vsub.f32 1.0, %v1086_v8  ;;  %vm1091_vm14 = vweird.f32 %v1542_v52  ;;  %v741_v12 = vmul.f32 %v1544_v11, %v2007_v35 }
  0xfc   : > { %1547 = vpow2.f32 %v1404_v60  ;;  %1203 = vst [vmem:[%s1796_s13 + $0x58] sm:$0xff] %v1171_v15  ;;  %v969_v21 = vadd.f32 %v1540_v47, %v968_v16  ;;  %v1412_v22 = vmul.f32 -1.442695, %v1970_v5  ;;  %v1389_v23 = vmul.f32 -1.442695, %v1979_v13  ;;  %vm1092_vm1 = vmor %vm1090_vm10, %vm1091_vm14 }
  0xfd   : > { %v2060_v0 = vadd.f32 %v1697_v24, %v404_v10  ;;  %v1088_v29 = vmul.f32 %v1542_v52, %v1087_v17  ;;  %v742_v31 = vsub.f32 1.0, %v741_v12  ;;  %vm746_vm0 = vweird.f32 %v1544_v11  ;;  %v427_v55 = vpop.f32.mrf.mxu2 }
  0xfe   : > { %v2066_v49 = vadd.f32 %v1697_v24, %v424_v2  ;;  %v1546_v57 = vpop.eup %1545  ;;  %v973_v32 = vsel %vm972_vm15, %v1540_v47, %v969_v21  ;;  %1549 = vpow2.f32 %v1412_v22  ;;  %v2070_v25 = vadd.f32 %v1697_v24, %v444_v33  ;;  %vm747_vm3 = vmor %vm745_vm11, %vm746_vm0 }
  0xff   : > { %v1397_v18 = vmul.f32 -1.442695, %v2060_v0  ;;  %v978_v26 = vsel %vm2031_vm8, %v977_v3, %v973_v32  ;;  %v1089_v20 = vadd.f32 %v1542_v52, %v1088_v29  ;;  %v743_v36 = vmul.f32 %v1544_v11, %v742_v31 }
 0x100   : > { %v2074_v40 = vadd.f32 1.0, %v1546_v57  ;;  %v1179_v42 = vmul.f32 %v978_v26, %v1904_v6  ;;  %v1097_v19 = vor.u32 1.1754944e-38, %v1096_v4  ;;  %vm2080_vm2 = vcmp.eq.f32.partialorder %v749_v62, 8.507059e+37 }
 0x101   : > { %1551 = vpow2.f32 %v1389_v23  ;;  %v1093_v50 = vsel %vm1092_vm1, %v1542_v52, %v1089_v20  ;;  %v744_v37 = vadd.f32 %v1544_v11, %v743_v36  ;;  %v752_v60 = vor.u32 1.1754944e-38, %v751_v63 }
 0x102   : > { %v1548_v44 = vpop.eup %1547  ;;  %1553 = vrcp.f32 %v2074_v40  ;;  %1211 = vst [vmem:[%s1796_s13 + $0x98] sm:$0xff] %v1179_v42  ;;  %v1098_v6 = vsel %vm2047_vm13, %v1097_v19, %v1093_v50  ;;  %v1405_v45 = vmul.f32 -1.442695, %v2066_v49  ;;  %v2095_v46 = vadd.f32 %v1697_v24, %v387_v41 }
 0x103   : > { %v2091_v34 = vadd.f32 1.0, %v1548_v44  ;;  %v1187_v47 = vmul.f32 %v1098_v6, %v1913_v14  ;;  %v748_v51 = vsel %vm747_vm3, %v1544_v11, %v744_v37  ;;  %1555 = vpow2.f32 %v1397_v18 }
 0x104   : > { %v1413_v53 = vmul.f32 -1.442695, %v2070_v25  ;;  %v1550_v39 = vpop.eup %1549  ;;  %v753_v54 = vsel %vm2080_vm2, %v752_v60, %v748_v51  ;;  %v869_v35 = vand.u32 2147483647, %v2074_v40  ;;  %v871_v58 = vand.u32 2147483648, %v2074_v40 }
 0x105   : > { %1557 = vrcp.f32 %v2091_v34  ;;  %1219 = vst [vmem:[%s1796_s13 + $0xd8] sm:$0xff] %v1187_v47  ;;  %v1164_v61 = vmul.f32 %v753_v54, %v1929_v30  ;;  %vm865_vm4 = vweird.f32 %v2074_v40  ;;  %v2107_v14 = vadd.f32 1.0, %v1550_v39 }
 0x106   : > { %1559 = vpow2.f32 %v1405_v45  ;;  %v989_v4 = vand.u32 2147483647, %v2091_v34  ;;  %v1390_v48 = vmul.f32 -1.442695, %v2095_v46  ;;  %vm2115_vm5 = vcmp.eq.f32.partialorder %v869_v35, 8.507059e+37 }
 0x107   : > { %v1552_v28 = vpop.eup %1551  ;;  %1196 = vst [vmem:[%s1796_s13 + $0x20] sm:$0xff] %v1164_v61  ;;  %1561 = vpow2.f32 %v1413_v53  ;;  %v872_v7 = vor.u32 1.1754944e-38, %v871_v58  ;;  %vm985_vm6 = vweird.f32 %v2091_v34  ;;  %v991_v8 = vand.u32 2147483648, %v2091_v34 }
 0x108   : > { %v1554_v3 = vpop.eup %1553  ;;  %v2111_v52 = vadd.f32 1.0, %v1552_v28  ;;  %1563 = vrcp.f32 %v2107_v14  ;;  %v2124_v9 = vadd.f32 %v1697_v24, %v407_v1  ;;  %v1111_v15 = vand.u32 2147483648, %v2107_v14 }
 0x109   : > { %v861_v59 = vmul.f32 %v1554_v3, %v2074_v40  ;;  %v1556_v38 = vpop.eup %1555  ;;  %v2130_v62 = vadd.f32 %v1697_v24, %v427_v55  ;;  %vm2133_vm7 = vcmp.eq.f32.partialorder %v989_v4, 8.507059e+37  ;;  %v1109_v17 = vand.u32 2147483647, %v2107_v14 }
 0x10a   : > { %1565 = vrcp.f32 %v2111_v52  ;;  %v2127_v16 = vadd.f32 1.0, %v1556_v38  ;;  %v766_v12 = vand.u32 2147483648, %v2111_v52  ;;  %vm866_vm8 = vweird.f32 %v1554_v3 }
 0x10b   : > { %v1558_v10 = vpop.eup %1557  ;;  %v862_v11 = vsub.f32 1.0, %v861_v59  ;;  %v764_v22 = vand.u32 2147483647, %v2111_v52  ;;  %v992_v29 = vor.u32 1.1754944e-38, %v991_v8  ;;  %vm1105_vm10 = vweird.f32 %v2107_v14  ;;  %vm867_vm12 = vmor %vm865_vm4, %vm866_vm8 }
 0x10c   : > { %v981_v63 = vmul.f32 %v1558_v10, %v2091_v34  ;;  %v1560_v33 = vpop.eup %1559  ;;  %1567 = vrcp.f32 %v2127_v16  ;;  %vm986_vm9 = vweird.f32 %v1558_v10  ;;  %v1112_v32 = vor.u32 1.1754944e-38, %v1111_v15 }
 0x10d   : > { %v863_v21 = vmul.f32 %v1554_v3, %v862_v11  ;;  %v1562_v23 = vpop.eup %1561  ;;  %vm760_vm11 = vweird.f32 %v2111_v52  ;;  %v2143_v18 = vadd.f32 1.0, %v1560_v33  ;;  %1569 = vpow2.f32 %v1390_v48  ;;  %vm987_vm15 = vmor %vm985_vm6, %vm986_vm9 }
 0x10e   : > { %v982_v24 = vsub.f32 1.0, %v981_v63  ;;  %v1564_v31 = vpop.eup %1563  ;;  %vm2149_vm13 = vcmp.eq.f32.partialorder %v1109_v17, 8.507059e+37  ;;  %v767_v42 = vor.u32 1.1754944e-38, %v766_v12  ;;  %v884_v19 = vand.u32 2147483647, %v2127_v16 }
 0x10f   : > { %v864_v57 = vadd.f32 %v1554_v3, %v863_v21  ;;  %v1101_v36 = vmul.f32 %v1564_v31, %v2107_v14  ;;  %vm2155_vm14 = vcmp.eq.f32.partialorder %v764_v22, 8.507059e+37  ;;  %v886_v40 = vand.u32 2147483648, %v2127_v16  ;;  %v447_v14 = vpop.f32.mrf.mxu3 }
 0x110   : > { %v1566_v26 = vpop.eup %1565  ;;  %v983_v20 = vmul.f32 %v1558_v10, %v982_v24  ;;  %v2160_v37 = vadd.f32 1.0, %v1562_v23  ;;  %1571 = vrcp.f32 %v2143_v18  ;;  %vm1106_vm0 = vweird.f32 %v1564_v31  ;;  %v389_v24 = vpop.f32.mrf.mxu0 }
 0x111   : > { %v868_v43 = vsel %vm867_vm12, %v1554_v3, %v864_v57  ;;  %v756_v44 = vmul.f32 %v1566_v26, %v2111_v52  ;;  %v1102_v45 = vsub.f32 1.0, %v1101_v36  ;;  %vm880_vm1 = vweird.f32 %v2127_v16  ;;  %vm1107_vm4 = vmor %vm1105_vm10, %vm1106_vm0  ;;  %v409_v57 = vpop.f32.mrf.mxu1 }
 0x112   : > { %v873_v60 = vsel %vm2115_vm5, %v872_v7, %v868_v43  ;;  %v984_v6 = vadd.f32 %v1558_v10, %v983_v20  ;;  %v1568_v47 = vpop.eup %1567  ;;  %vm2171_vm2 = vcmp.eq.f32.partialorder %v884_v19, 8.507059e+37  ;;  %vm761_vm3 = vweird.f32 %v1566_v26  ;;  %v1605_v43 = vld [vmem:[%s2367_s2] ss:$0 sm:$0xff] }
 0x113   : > { %v1172_v51 = vmul.f32 %v873_v60, %v1957_v27  ;;  %v757_v53 = vsub.f32 1.0, %v756_v44  ;;  %v1103_v54 = vmul.f32 %v1564_v31, %v1102_v45  ;;  %v876_v35 = vmul.f32 %v1568_v47, %v2127_v16  ;;  %v1570_v61 = vpop.eup %1569 }
 0x114   : > { %v988_v39 = vsel %vm987_vm15, %v1558_v10, %v984_v6  ;;  %v887_v28 = vor.u32 1.1754944e-38, %v886_v40  ;;  %1573 = vrcp.f32 %v2160_v37  ;;  %vm881_vm5 = vweird.f32 %v1568_v47 }
 0x115   : > { %1204 = vst [vmem:[%s1796_s13 + $0x60] sm:$0xff] %v1172_v51  ;;  %v993_v27 = vsel %vm2133_vm7, %v992_v29, %v988_v39  ;;  %v758_v34 = vmul.f32 %v1566_v26, %v757_v53  ;;  %v1104_v3 = vadd.f32 %v1564_v31, %v1103_v54  ;;  %v877_v4 = vsub.f32 1.0, %v876_v35  ;;  %vm762_vm7 = vmor %vm760_vm11, %vm761_vm3 }
 0x116   : > { %v1180_v1 = vmul.f32 %v993_v27, %v1967_v56  ;;  %vm1000_vm6 = vweird.f32 %v2143_v18  ;;  %v1004_v55 = vand.u32 2147483647, %v2143_v18  ;;  %v1572_v59 = vpop.eup %1571  ;;  %v1006_v7 = vand.u32 2147483648, %v2143_v18  ;;  %vm882_vm8 = vmor %vm880_vm1, %vm881_vm5 }
 0x117   : > { %v759_v48 = vadd.f32 %v1566_v26, %v758_v34  ;;  %v1108_v30 = vsel %vm1107_vm4, %v1564_v31, %v1104_v3  ;;  %v878_v56 = vmul.f32 %v1568_v47, %v877_v4  ;;  %v2189_v38 = vadd.f32 1.0, %v1570_v61  ;;  %v449_v39 = vpop.f32.mrf.mxu3 }
 0x118   : > { %1212 = vst [vmem:[%s1796_s13 + $0xa0] sm:$0xff] %v1180_v1  ;;  %v1113_v8 = vsel %vm2149_vm13, %v1112_v32, %v1108_v30  ;;  %v996_v11 = vmul.f32 %v1572_v59, %v2143_v18  ;;  %v1124_v15 = vand.u32 2147483647, %v2160_v37  ;;  %v1126_v17 = vand.u32 2147483648, %v2160_v37  ;;  %v429_v32 = vpop.f32.mrf.mxu2 }
 0x119   : > { %v763_v10 = vsel %vm762_vm7, %v1566_v26, %v759_v48  ;;  %v1188_v63 = vmul.f32 %v1113_v8, %v1970_v5  ;;  %v879_v2 = vadd.f32 %v1568_v47, %v878_v56  ;;  %vm2203_vm9 = vcmp.eq.f32.partialorder %v1004_v55, 8.507059e+37 }
 0x11a   : > { %v768_v52 = vsel %vm2155_vm14, %v767_v42, %v763_v10  ;;  %v997_v33 = vsub.f32 1.0, %v996_v11  ;;  %1575 = vrcp.f32 %v2189_v38  ;;  %v1574_v5 = vpop.eup %1573  ;;  %vm1001_vm10 = vweird.f32 %v1572_v59 }
 0x11b   : > { %v1165_v12 = vmul.f32 %v768_v52, %v1979_v13  ;;  %1220 = vst [vmem:[%s1796_s13 + $0xe0] sm:$0xff] %v1188_v63  ;;  %v883_v22 = vsel %vm882_vm8, %v1568_v47, %v879_v2  ;;  %v1007_v23 = vor.u32 1.1754944e-38, %v1006_v7  ;;  %vm1120_vm11 = vweird.f32 %v2160_v37  ;;  %vm1002_vm14 = vmor %vm1000_vm6, %vm1001_vm10 }
 0x11c   : > { %v888_v13 = vsel %vm2171_vm2, %v887_v28, %v883_v22  ;;  %v998_v16 = vmul.f32 %v1572_v59, %v997_v33  ;;  %v1116_v29 = vmul.f32 %v1574_v5, %v2160_v37  ;;  %vm2214_vm12 = vcmp.eq.f32.partialorder %v1124_v15, 8.507059e+37 }
 0x11d   : > { %1197 = vst [vmem:[%s1796_s13 + $0x28] sm:$0xff] %v1165_v12  ;;  %v1173_v26 = vmul.f32 %v888_v13, %v2060_v0  ;;  %vm1121_vm13 = vweird.f32 %v1574_v5  ;;  %v1127_v20 = vor.u32 1.1754944e-38, %v1126_v17  ;;  %v1398_v36 = vmul.f32 -1.442695, %v2124_v9 }
 0x11e   : > { %v999_v41 = vadd.f32 %v1572_v59, %v998_v16  ;;  %v1117_v42 = vsub.f32 1.0, %v1116_v29  ;;  %v1406_v19 = vmul.f32 -1.442695, %v2130_v62  ;;  %v2224_v44 = vadd.f32 %v1605_v43, %v447_v14  ;;  %vm1122_vm0 = vmor %vm1120_vm11, %vm1121_vm13 }
 0x11f   : > { %1205 = vst [vmem:[%s1796_s13 + $0x68] sm:$0xff] %v1173_v26  ;;  %1577 = vpow2.f32 %v1398_v36  ;;  %v2230_v0 = vadd.f32 %v1605_v43, %v389_v24  ;;  %v2232_v50 = vadd.f32 %v1605_v43, %v409_v57  ;;  %v2234_v40 = vadd.f32 %v1605_v43, %v429_v32 }
 0x120   : > { %v1576_v60 = vpop.eup %1575  ;;  %v1003_v6 = vsel %vm1002_vm14, %v1572_v59, %v999_v41  ;;  %v1118_v45 = vmul.f32 %v1574_v5, %v1117_v42  ;;  %1579 = vpow2.f32 %v1406_v19  ;;  %v1414_v47 = vmul.f32 -1.442695, %v2224_v44 }
 0x121   : > { %v1008_v51 = vsel %vm2203_vm9, %v1007_v23, %v1003_v6  ;;  %v771_v18 = vmul.f32 %v1576_v60, %v2189_v38  ;;  %vm775_vm15 = vweird.f32 %v2189_v38  ;;  %v1391_v53 = vmul.f32 -1.442695, %v2230_v0 }
 0x122   : > { %v1181_v54 = vmul.f32 %v1008_v51, %v2066_v49  ;;  %v1119_v35 = vadd.f32 %v1574_v5, %v1118_v45  ;;  %1581 = vpow2.f32 %v1414_v47  ;;  %v1399_v58 = vmul.f32 -1.442695, %v2232_v50 }
 0x123   : > { %v772_v61 = vsub.f32 1.0, %v771_v18  ;;  %v779_v27 = vand.u32 2147483647, %v2189_v38  ;;  %1583 = vpow2.f32 %v1391_v53  ;;  %v1407_v34 = vmul.f32 -1.442695, %v2234_v40 }
 0x124   : > { %1213 = vst [vmem:[%s1796_s13 + $0xa8] sm:$0xff] %v1181_v54  ;;  %v1123_v28 = vsel %vm1122_vm0, %v1574_v5, %v1119_v35  ;;  %v781_v1 = vand.u32 2147483648, %v2189_v38  ;;  %1585 = vpow2.f32 %v1399_v58  ;;  %v2251_v49 = vadd.f32 %v1605_v43, %v449_v39 }
 0x125   : > { %v1578_v3 = vpop.eup %1577  ;;  %v1128_v4 = vsel %vm2214_vm12, %v1127_v20, %v1123_v28  ;;  %v773_v37 = vmul.f32 %v1576_v60, %v772_v61  ;;  %vm776_vm1 = vweird.f32 %v1576_v60  ;;  %1587 = vpow2.f32 %v1407_v34 }
 0x126   : > { %v1580_v48 = vpop.eup %1579  ;;  %v1189_v55 = vmul.f32 %v1128_v4, %v2070_v25  ;;  %v2256_v59 = vadd.f32 1.0, %v1578_v3  ;;  %vm777_vm2 = vmor %vm775_vm15, %vm776_vm1  ;;  %v782_v14 = vor.u32 1.1754944e-38, %v781_v1  ;;  %v1415_v8 = vmul.f32 -1.442695, %v2251_v49 }
 0x127   : > { %v774_v30 = vadd.f32 %v1576_v60, %v773_v37  ;;  %v2258_v56 = vadd.f32 1.0, %v1580_v48  ;;  %vm780_vm3 = vcmp.eq.f32.partialorder %v779_v27, 8.507059e+37 }
 0x128   : > { %v1582_v7 = vpop.eup %1581  ;;  %1221 = vst [vmem:[%s1796_s13 + $0xe8] sm:$0xff] %v1189_v55  ;;  %1589 = vrcp.f32 %v2256_v59  ;;  %v899_v2 = vand.u32 2147483647, %v2256_v59  ;;  %v901_v12 = vand.u32 2147483648, %v2256_v59  ;;  %vm895_vm4 = vweird.f32 %v2256_v59 }
 0x129   : > { %v1584_v10 = vpop.eup %1583  ;;  %v778_v11 = vsel %vm777_vm2, %v1576_v60, %v774_v30  ;;  %1591 = vrcp.f32 %v2258_v56  ;;  %v2268_v38 = vadd.f32 1.0, %v1582_v7  ;;  %v1019_v5 = vand.u32 2147483647, %v2258_v56 }
 0x12a   : > { %v1586_v25 = vpop.eup %1585  ;;  %v783_v15 = vsel %vm780_vm3, %v782_v14, %v778_v11  ;;  %v2270_v17 = vadd.f32 1.0, %v1584_v10  ;;  %1593 = vpow2.f32 %v1415_v8  ;;  %v1021_v22 = vand.u32 2147483648, %v2258_v56 }
 0x12b   : > { %v1588_v63 = vpop.eup %1587  ;;  %v1166_v52 = vmul.f32 %v783_v15, %v2095_v46  ;;  %1595 = vrcp.f32 %v2268_v38  ;;  %v2275_v33 = vadd.f32 1.0, %v1586_v25  ;;  %vm2284_vm5 = vcmp.eq.f32.partialorder %v899_v2, 8.507059e+37 }
 0x12c   : > { %1597 = vrcp.f32 %v2270_v17  ;;  %v2280_v46 = vadd.f32 1.0, %v1588_v63  ;;  %vm1015_vm6 = vweird.f32 %v2258_v56  ;;  %v902_v16 = vor.u32 1.1754944e-38, %v901_v12 }
 0x12d   : > { %1198 = vst [vmem:[%s1796_s13 + $0x30] sm:$0xff] %v1166_v52  ;;  %v1139_v31 = vand.u32 2147483647, %v2268_v38  ;;  %v1141_v57 = vand.u32 2147483648, %v2268_v38  ;;  %v794_v26 = vand.u32 2147483647, %v2270_v17  ;;  %1599 = vrcp.f32 %v2275_v33 }
 0x12e   : > { %v1590_v21 = vpop.eup %1589  ;;  %v796_v20 = vand.u32 2147483648, %v2270_v17  ;;  %vm2295_vm7 = vcmp.eq.f32.partialorder %v1019_v5, 8.507059e+37  ;;  %v1022_v19 = vor.u32 1.1754944e-38, %v1021_v22  ;;  %1601 = vrcp.f32 %v2280_v46 }
 0x12f   : > { %v1592_v23 = vpop.eup %1591  ;;  %v891_v24 = vmul.f32 %v1590_v21, %v2256_v59  ;;  %vm896_vm8 = vweird.f32 %v1590_v21  ;;  %vm1135_vm9 = vweird.f32 %v2268_v38  ;;  %vm790_vm10 = vweird.f32 %v2270_v17 }
 0x130   : > { %v1011_v29 = vmul.f32 %v1592_v23, %v2258_v56  ;;  %v1594_v36 = vpop.eup %1593  ;;  %vm1016_vm11 = vweird.f32 %v1592_v23  ;;  %vm2303_vm12 = vcmp.eq.f32.partialorder %v1139_v31, 8.507059e+37  ;;  %v1142_v18 = vor.u32 1.1754944e-38, %v1141_v57  ;;  %vm897_vm14 = vmor %vm895_vm4, %vm896_vm8 }
 0x131   : > { %v892_v32 = vsub.f32 1.0, %v891_v24  ;;  %v1596_v43 = vpop.eup %1595  ;;  %vm2308_vm13 = vcmp.eq.f32.partialorder %v794_v26, 8.507059e+37  ;;  %v797_v35 = vor.u32 1.1754944e-38, %v796_v20  ;;  %vm910_vm15 = vweird.f32 %v2275_v33  ;;  %vm1017_vm0 = vmor %vm1015_vm6, %vm1016_vm11 }
 0x132   : > { %v1012_v41 = vsub.f32 1.0, %v1011_v29  ;;  %v1598_v6 = vpop.eup %1597  ;;  %v1131_v47 = vmul.f32 %v1596_v43, %v2268_v38  ;;  %v914_v27 = vand.u32 2147483647, %v2275_v33  ;;  %vm1136_vm1 = vweird.f32 %v1596_v43 }
 0x133   : > { %v893_v60 = vmul.f32 %v1590_v21, %v892_v32  ;;  %v786_v39 = vmul.f32 %v1598_v6, %v2270_v17  ;;  %v1600_v34 = vpop.eup %1599  ;;  %v2319_v3 = vadd.f32 1.0, %v1594_v36  ;;  %vm791_vm2 = vweird.f32 %v1598_v6  ;;  %vm1137_vm3 = vmor %vm1135_vm9, %vm1136_vm1 }
 0x134   : > { %v1013_v45 = vmul.f32 %v1592_v23, %v1012_v41  ;;  %v1132_v61 = vsub.f32 1.0, %v1131_v47  ;;  %v1602_v4 = vpop.eup %1601  ;;  %v906_v59 = vmul.f32 %v1600_v34, %v2275_v33  ;;  %v916_v15 = vand.u32 2147483648, %v2275_v33  ;;  %vm792_vm4 = vmor %vm790_vm10, %vm791_vm2 }
 0x135   : > { %v894_v53 = vadd.f32 %v1590_v21, %v893_v60  ;;  %v787_v1 = vsub.f32 1.0, %v786_v39  ;;  %v1026_v11 = vmul.f32 %v1602_v4, %v2280_v46  ;;  %1603 = vrcp.f32 %v2319_v3 }
 0x136   : > { %v1014_v58 = vadd.f32 %v1592_v23, %v1013_v45  ;;  %v1133_v55 = vmul.f32 %v1596_v43, %v1132_v61  ;;  %v907_v10 = vsub.f32 1.0, %v906_v59  ;;  %vm1031_vm6 = vweird.f32 %v1602_v4 }
 0x137   : > { %v898_v28 = vsel %vm897_vm14, %v1590_v21, %v894_v53  ;;  %v788_v7 = vmul.f32 %v1598_v6, %v787_v1  ;;  %v1027_v52 = vsub.f32 1.0, %v1026_v11  ;;  %v1036_v12 = vand.u32 2147483648, %v2280_v46 }
 0x138   : > { %v903_v37 = vsel %vm2284_vm5, %v902_v16, %v898_v28  ;;  %v1018_v48 = vsel %vm1017_vm0, %v1592_v23, %v1014_v58  ;;  %v1134_v8 = vadd.f32 %v1596_v43, %v1133_v55  ;;  %vm911_vm5 = vweird.f32 %v1600_v34 }
 0x139   : > { %v1174_v30 = vmul.f32 %v903_v37, %v2124_v9  ;;  %v1023_v56 = vsel %vm2295_vm7, %v1022_v19, %v1018_v48  ;;  %v789_v25 = vadd.f32 %v1598_v6, %v788_v7  ;;  %v1034_v9 = vand.u32 2147483647, %v2280_v46  ;;  %vm912_vm7 = vmor %vm910_vm15, %vm911_vm5 }
 0x13a   : > { %v1182_v14 = vmul.f32 %v1023_v56, %v2130_v62  ;;  %v1138_v63 = vsel %vm1137_vm3, %v1596_v43, %v1134_v8  ;;  %v908_v62 = vmul.f32 %v1600_v34, %v907_v10  ;;  %v1028_v17 = vmul.f32 %v1602_v4, %v1027_v52 }
 0x13b   : > { %1206 = vst [vmem:[%s1796_s13 + $0x70] sm:$0xff] %v1174_v30  ;;  %v1143_v2 = vsel %vm2303_vm12, %v1142_v18, %v1138_v63  ;;  %v793_v38 = vsel %vm792_vm4, %v1598_v6, %v789_v25  ;;  %v917_v24 = vor.u32 1.1754944e-38, %v916_v15  ;;  %vm915_vm8 = vcmp.eq.f32.partialorder %v914_v27, 8.507059e+37 }
 0x13c   : > { %1214 = vst [vmem:[%s1796_s13 + $0xb0] sm:$0xff] %v1182_v14  ;;  %v1190_v21 = vmul.f32 %v1143_v2, %v2224_v44  ;;  %v798_v5 = vsel %vm2308_vm13, %v797_v35, %v793_v38  ;;  %v909_v22 = vadd.f32 %v1600_v34, %v908_v62  ;;  %v1029_v16 = vadd.f32 %v1602_v4, %v1028_v17  ;;  %v1604_v44 = vpop.eup %1603 }
 0x13d   : > { %v1167_v23 = vmul.f32 %v798_v5, %v2230_v0  ;;  %vm1030_vm9 = vweird.f32 %v2280_v46  ;;  %v1037_v31 = vor.u32 1.1754944e-38, %v1036_v12  ;;  %vm1035_vm11 = vcmp.eq.f32.partialorder %v1034_v9, 8.507059e+37 }
 0x13e   : > { %1222 = vst [vmem:[%s1796_s13 + $0xf0] sm:$0xff] %v1190_v21  ;;  %v913_v13 = vsel %vm912_vm7, %v1600_v34, %v909_v22  ;;  %vm1032_vm10 = vmor %vm1030_vm9, %vm1031_vm6  ;;  %v1146_v33 = vmul.f32 %v1604_v44, %v2319_v3  ;;  %v1156_v46 = vand.u32 2147483648, %v2319_v3  ;;  %vm1151_vm12 = vweird.f32 %v1604_v44 }
 0x13f   : > { %1199 = vst [vmem:[%s1796_s13 + $0x38] sm:$0xff] %v1167_v23  ;;  %v918_v29 = vsel %vm915_vm8, %v917_v24, %v913_v13  ;;  %v1033_v57 = vsel %vm1032_vm10, %v1602_v4, %v1029_v16  ;;  %v1154_v41 = vand.u32 2147483647, %v2319_v3  ;;  %vm1150_vm13 = vweird.f32 %v2319_v3 }
 0x140   : > { %v1175_v0 = vmul.f32 %v918_v29, %v2232_v50  ;;  %v1038_v32 = vsel %vm1035_vm11, %v1037_v31, %v1033_v57  ;;  %v1147_v20 = vsub.f32 1.0, %v1146_v33  ;;  %vm1152_vm14 = vmor %vm1150_vm13, %vm1151_vm12  ;;  %v1157_v50 = vor.u32 1.1754944e-38, %v1156_v46 }
 0x141   : > { %v1183_v26 = vmul.f32 %v1038_v32, %v2234_v40  ;;  %vm1155_vm15 = vcmp.eq.f32.partialorder %v1154_v41, 8.507059e+37 }
 0x142   : > { %1207 = vst [vmem:[%s1796_s13 + $0x78] sm:$0xff] %v1175_v0  ;;  %v1148_v36 = vmul.f32 %v1604_v44, %v1147_v20 }
 0x143   : > { %1215 = vst [vmem:[%s1796_s13 + $0xb8] sm:$0xff] %v1183_v26 }
 0x144   : > { %v1149_v42 = vadd.f32 %v1604_v44, %v1148_v36 }
 0x146   : > { %v1153_v19 = vsel %vm1152_vm14, %v1604_v44, %v1149_v42 }
 0x147   : > { %v1158_v43 = vsel %vm1155_vm15, %v1157_v50, %v1153_v19 }
 0x148   : > { %v1191_v60 = vmul.f32 %v1158_v43, %v2251_v49 }
 0x14a   : > { %1223 = vst [vmem:[%s1796_s13 + $0xf8] sm:$0xff] %v1191_v60 }
 0x14b PF: > { %s13_s12 = sadd.s32 1, %s1612_s12  }
 0x14c   : > { %p10_p4 = scmp.ge.s32.totalorder %s13_s12, 4  }
 0x14e   :  { %12 = sbr.rel (!%p10_p4) target bundleno = 1 (0x1), region = 62 }

</bundles_post_ra>
